<compile_context>
chip_gen: v5e
topology: v5e:2x2
jax: 0.10.0
libtpu: 0.0.40
codegen_flags: <defaults>
</compile_context>

<pallas_src>
import functools

import jax
import jax.numpy as jnp
from jax.experimental import pallas as pl
from jax.experimental.pallas import tpu as pltpu


# ----------------------------------------------------------------------------
# Plain-JAX glue: im2col patch extraction (3x3, stride 1, pad 1)
# ----------------------------------------------------------------------------
def _im2col(x_nchw, k=3, pad=1):
    """(N, C, H, W) -> (N, H*W, C*k*k)."""
    N, C, H, W = x_nchw.shape
    xp = jnp.pad(x_nchw, ((0, 0), (0, 0), (pad, pad), (pad, pad)))
    cols = []
    for di in range(k):
        for dj in range(k):
            cols.append(xp[:, :, di:di + H, dj:dj + W])        # (N, C, H, W)
    p = jnp.stack(cols, axis=-1)                               # (N, C, H, W, k*k)
    p = p.transpose(0, 2, 3, 1, 4)                             # (N, H, W, C, k*k)
    return p.reshape(N, H * W, C * k * k)


def _round_up(x, m):
    return (x + m - 1) // m * m


def _pad2(a, rows, cols):
    r, c = a.shape
    return jnp.pad(a, ((0, rows - r), (0, cols - c)))


# ----------------------------------------------------------------------------
# Pallas kernel
# ----------------------------------------------------------------------------
def _tvnet_kernel(last_activation, num_classes, compute_dtype,
                  patch_ref, wc_ref, bc_ref,
                  w1_ref, b1_ref, w2_ref, b2_ref, w3_ref, b3_ref,
                  o_ref, pooled_ref):
    i = pl.program_id(0)
    BT, HW, CKK = patch_ref.shape            # static block shape
    FEATp = wc_ref.shape[1]
    inv_hw = 1.0 / float(HW)

    @pl.when(i == 0)
    def _():
        pooled_ref[...] = jnp.zeros_like(pooled_ref)

    # base: conv expressed as one big matmul over BT samples, ReLU, GAP (f32)
    p = patch_ref[...].reshape(BT * HW, CKK)
    h = jnp.dot(p, wc_ref[...], preferred_element_type=jnp.float32)
    h = jnp.maximum(h + bc_ref[...], 0.0)                      # (BT*HW, FEATp) f32
    pooled = jnp.sum(h.reshape(BT, HW, FEATp), axis=1) * inv_hw  # (BT, FEATp) f32

    start = i * BT
    if BT % 8 == 0:
        start = pl.multiple_of(start, 8)     # sublane-aligned unmasked store
    pooled_ref[pl.ds(start, BT), :] = pooled

    # head: run ONCE, batched over all (padded) samples, at the last grid step
    @pl.when(i == pl.num_programs(0) - 1)
    def _():
        z = pooled_ref[...].astype(compute_dtype)              # (N_pad, FEATp)
        h1 = jnp.dot(z, w1_ref[...],
                     preferred_element_type=jnp.float32) + b1_ref[...]
        h2 = jnp.dot(h1.astype(compute_dtype), w2_ref[...],
                     preferred_element_type=jnp.float32) + b2_ref[...]
        logits = jnp.dot(h2.astype(compute_dtype), w3_ref[...],
                         preferred_element_type=jnp.float32) + b3_ref[...]

        if last_activation in ("softmax", "log_softmax"):
            # mask padded class lanes so they do not pollute the denominator
            col = jax.lax.broadcasted_iota(jnp.int32, logits.shape, 1)
            logits = jnp.where(col < num_classes, logits, -jnp.inf)
            m = jnp.max(logits, axis=1, keepdims=True)
            zc = logits - m
            if last_activation == "softmax":
                e = jnp.exp(zc)
                logits = e * pl.reciprocal(jnp.sum(e, axis=1, keepdims=True))
            else:
                logits = zc - jnp.log(jnp.sum(jnp.exp(zc), axis=1, keepdims=True))

        o_ref[...] = logits.astype(o_ref.dtype)


def torchvision_net_forward(x, params, last_activation=None,
                            compute_dtype=jnp.float32, batch_tile=32):
    """x: (N, C, H, W) float32 -> (N, num_classes) float32."""
    N, C, H, W = x.shape
    patches = _im2col(x)                                       # (N, HW, CKK) f32
    HW, CKK = patches.shape[1], patches.shape[2]
    wc, bc, w1, b1, w2, b2, w3, b3 = params
    feat = wc.shape[1]
    num_classes = w3.shape[1]

    # lane-dense padded dims
    FEATp = _round_up(feat, 128)
    H1p = _round_up(w1.shape[1], 128)
    H2p = _round_up(w2.shape[1], 128)
    NCp = _round_up(num_classes, 128)

    # batch tiling (keep BT a multiple of 8 when possible for aligned stores)
    BT = max(1, min(batch_tile, N))
    if BT >= 8:
        BT = (BT // 8) * 8
    n_tiles = (N + BT - 1) // BT
    Nb = n_tiles * BT
    N_pad = max(_round_up(Nb, 8), 8)

    if Nb > N:
        patches = jnp.pad(patches, ((0, Nb - N), (0, 0), (0, 0)))
    patches = patches.astype(compute_dtype)

    # zero-pad weights once, wrapper-side (biases stay f32: added post-matmul)
    wcp = _pad2(wc, CKK, FEATp).astype(compute_dtype)
    bcp = _pad2(bc, 1, FEATp).astype(jnp.float32)
    w1p = _pad2(w1, FEATp, H1p).astype(compute_dtype)
    b1p = _pad2(b1, 1, H1p).astype(jnp.float32)
    w2p = _pad2(w2, H1p, H2p).astype(compute_dtype)
    b2p = _pad2(b2, 1, H2p).astype(jnp.float32)
    w3p = _pad2(w3, H2p, NCp).astype(compute_dtype)
    b3p = _pad2(b3, 1, NCp).astype(jnp.float32)

    kernel = functools.partial(_tvnet_kernel, last_activation, num_classes,
                               compute_dtype)

    def const_spec(shape):
        return pl.BlockSpec(shape, lambda i, _s=len(shape): (0,) * _s)

    itemsize = jnp.dtype(compute_dtype).itemsize
    flops = (2 * Nb * HW * CKK * FEATp
             + 2 * N_pad * (FEATp * H1p + H1p * H2p + H2p * NCp))
    transcendentals = (N_pad * NCp
                       if last_activation in ("softmax", "log_softmax") else 0)
    bytes_accessed = (Nb * HW * CKK * itemsize
                      + (CKK * FEATp + FEATp * H1p + H1p * H2p + H2p * NCp) * itemsize
                      + (FEATp + H1p + H2p + NCp) * 4
                      + N_pad * NCp * 4)

    out = pl.pallas_call(
        kernel,
        out_shape=jax.ShapeDtypeStruct((N_pad, NCp), jnp.float32),
        grid_spec=pltpu.PrefetchScalarGridSpec(
            num_scalar_prefetch=0,
            grid=(n_tiles,),
            in_specs=[
                pl.BlockSpec((BT, HW, CKK), lambda i: (i, 0, 0)),  # batch tile
                const_spec(wcp.shape), const_spec(bcp.shape),
                const_spec(w1p.shape), const_spec(b1p.shape),
                const_spec(w2p.shape), const_spec(b2p.shape),
                const_spec(w3p.shape), const_spec(b3p.shape),
            ],
            out_specs=pl.BlockSpec((N_pad, NCp), lambda i: (0, 0)),  # resident out
            scratch_shapes=[pltpu.VMEM((N_pad, FEATp), jnp.float32)],
        ),
        compiler_params=pltpu.CompilerParams(
            dimension_semantics=("arbitrary",)),
        cost_estimate=pl.CostEstimate(flops=flops,
                                      transcendentals=transcendentals,
                                      bytes_accessed=bytes_accessed),
    )(patches, wcp, bcp, w1p, b1p, w2p, b2p, w3p, b3p)

    return out[:N, :num_classes]


# ----------------------------------------------------------------------------
# Deterministic parameter init (synthetic; no checkpoint load)
# ----------------------------------------------------------------------------
def init_params(key, c_in, feat, head, num_classes, k=3):
    ks = jax.random.split(key, 8)
    ckk = c_in * k * k
    wc = jax.random.normal(ks[0], (ckk, feat), jnp.float32) / jnp.sqrt(ckk)
    bc = jax.random.normal(ks[1], (1, feat), jnp.float32) * 0.01
    dims = [feat] + list(head) + [num_classes]   # head.insert(0, in_feat); head.append(nc)
    ws, bs = [], []
    for i in range(3):
        w = jax.random.normal(ks[2 + 2 * i], (dims[i], dims[i + 1]), jnp.float32) \
            / jnp.sqrt(dims[i])
        b = jax.random.normal(ks[3 + 2 * i], (1, dims[i + 1]), jnp.float32) * 0.01
        ws.append(w)
        bs.append(b)
    return (wc, bc, ws[0], bs[0], ws[1], bs[1], ws[2], bs[2])


def reference_forward(x, params, last_activation=None):
    patches = _im2col(x)
    wc, bc, w1, b1, w2, b2, w3, b3 = params
    h = jnp.maximum(jnp.einsum('npk,kf->npf', patches, wc) + bc, 0.0)
    pooled = jnp.mean(h, axis=1)
    out = pooled @ w1 + b1
    out = out @ w2 + b2
    out = out @ w3 + b3
    if last_activation == "softmax":
        out = jax.nn.softmax(out, axis=1)
    elif last_activation == "log_softmax":
        out = jax.nn.log_softmax(out, axis=1)
    return out


if __name__ == "__main__":
    key = jax.random.PRNGKey(0)
    kx, kp = jax.random.split(key)

    N, C, H, W = 2, 4, 16, 16
    feat, head, num_classes = 64, (256, 128), 10
    last_activation = "log_softmax"

    x = jax.random.normal(kx, (N, C, H, W), jnp.float32)
    params = init_params(kp, C, feat, head, num_classes)

    ref = reference_forward(x, params, last_activation)

    # f32 path: tight numerical check
    out = torchvision_net_forward(x, params, last_activation,
                                  compute_dtype=jnp.float32)
    out = jax.block_until_ready(out)
    assert out.shape == (N, num_classes)
    assert jnp.allclose(out, ref, atol=1e-4, rtol=1e-4)

    # bf16 matmul-operand path (v6e/v7x fast path): loose sanity check
    out_bf = torchvision_net_forward(x, params, last_activation,
                                     compute_dtype=jnp.bfloat16)
    out_bf = jax.block_until_ready(out_bf)
    assert out_bf.shape == (N, num_classes)
    assert bool(jnp.all(jnp.isfinite(out_bf)))
    assert jnp.allclose(out_bf, ref, atol=0.5, rtol=0.1)

    print("KERNEL_OK")
</pallas_src>

<mosaic_0001>
module attributes {stable_mosaic.version = 11 : i64} {
  func.func @_tvnet_kernel(%arg0: i32, %arg1: memref<2x256x36xf32, #tpu.memory_space<vmem>>, %arg2: memref<36x128xf32, #tpu.memory_space<vmem>>, %arg3: memref<1x128xf32, #tpu.memory_space<vmem>>, %arg4: memref<128x256xf32, #tpu.memory_space<vmem>>, %arg5: memref<1x256xf32, #tpu.memory_space<vmem>>, %arg6: memref<256x128xf32, #tpu.memory_space<vmem>>, %arg7: memref<1x128xf32, #tpu.memory_space<vmem>>, %arg8: memref<128x128xf32, #tpu.memory_space<vmem>>, %arg9: memref<1x128xf32, #tpu.memory_space<vmem>>, %arg10: memref<8x128xf32, #tpu.memory_space<vmem>>, %arg11: memref<8x128xf32, #tpu.memory_space<vmem>>) attributes {dimension_semantics = [#tpu.dimension_semantics<arbitrary>], iteration_bounds = array<i64: 1>, scalar_prefetch = 0 : i64, scratch_operands = 1 : i64, tpu.core_type = #tpu.core_type<tc>, window_params = [{transform_indices = @transform_0, window_bounds = array<i64: 2, 256, 36>}, {pipeline_mode = #tpu.pipeline_mode<synchronous>, transform_indices = @transform_1, window_bounds = array<i64: 36, 128>}, {pipeline_mode = #tpu.pipeline_mode<synchronous>, transform_indices = @transform_2, window_bounds = array<i64: 1, 128>}, {pipeline_mode = #tpu.pipeline_mode<synchronous>, transform_indices = @transform_3, window_bounds = array<i64: 128, 256>}, {pipeline_mode = #tpu.pipeline_mode<synchronous>, transform_indices = @transform_4, window_bounds = array<i64: 1, 256>}, {pipeline_mode = #tpu.pipeline_mode<synchronous>, transform_indices = @transform_5, window_bounds = array<i64: 256, 128>}, {pipeline_mode = #tpu.pipeline_mode<synchronous>, transform_indices = @transform_6, window_bounds = array<i64: 1, 128>}, {pipeline_mode = #tpu.pipeline_mode<synchronous>, transform_indices = @transform_7, window_bounds = array<i64: 128, 128>}, {pipeline_mode = #tpu.pipeline_mode<synchronous>, transform_indices = @transform_8, window_bounds = array<i64: 1, 128>}, {pipeline_mode = #tpu.pipeline_mode<synchronous>, transform_indices = @transform_9, window_bounds = array<i64: 8, 128>}]} {
    %c0_i32 = arith.constant 0 : i32
    %0 = arith.cmpi eq, %arg0, %c0_i32 : i32
    %1 = arith.extui %0 : i1 to i32
    %c0_i32_0 = arith.constant 0 : i32
    %2 = arith.cmpi ne, %1, %c0_i32_0 : i32
    scf.if %2 {
      %cst_13 = arith.constant 0.000000e+00 : f32
      %22 = vector.broadcast %cst_13 : f32 to vector<8x128xf32>
      %c0_14 = arith.constant 0 : index
      %c0_15 = arith.constant 0 : index
      %23 = vector.load %arg11[%c0_14, %c0_15] : memref<8x128xf32, #tpu.memory_space<vmem>>, vector<8x128xf32>
      tpu.vector_store %arg11[%c0_14, %c0_15], %22 {strides = array<i32>} : memref<8x128xf32, #tpu.memory_space<vmem>>, vector<8x128xf32>,
    } else {
    }
    %c0 = arith.constant 0 : index
    %c0_1 = arith.constant 0 : index
    %c0_2 = arith.constant 0 : index
    %3 = vector.load %arg1[%c0, %c0_1, %c0_2] : memref<2x256x36xf32, #tpu.memory_space<vmem>>, vector<2x256x36xf32>
    %4 = vector.shape_cast %3 : vector<2x256x36xf32> to vector<512x36xf32>
    %c0_3 = arith.constant 0 : index
    %c0_4 = arith.constant 0 : index
    %5 = vector.load %arg2[%c0_3, %c0_4] : memref<36x128xf32, #tpu.memory_space<vmem>>, vector<36x128xf32>
    %cst = arith.constant dense<0.000000e+00> : vector<512x128xf32>
    %6 = tpu.matmul %4, %5, %cst {dimension_numbers = #tpu.dot_dimension_numbers<[1], [0], [0], [1], [0, 0, 1, 1], [], []>} : vector<512x36xf32>, vector<36x128xf32>, vector<512x128xf32> -> vector<512x128xf32>
    %c0_5 = arith.constant 0 : index
    %c0_6 = arith.constant 0 : index
    %7 = vector.load %arg3[%c0_5, %c0_6] : memref<1x128xf32, #tpu.memory_space<vmem>>, vector<1x128xf32>
    %8 = vector.broadcast %7 : vector<1x128xf32> to vector<512x128xf32>
    %9 = arith.addf %6, %8 : vector<512x128xf32>
    %cst_7 = arith.constant 0.000000e+00 : f32
    %10 = vector.broadcast %cst_7 : f32 to vector<512x128xf32>
    %11 = arith.maximumf %9, %10 : vector<512x128xf32>
    %12 = vector.shape_cast %11 : vector<512x128xf32> to vector<2x256x128xf32>
    %cst_8 = arith.constant dense<0.000000e+00> : vector<2x128xf32>
    %13 = vector.multi_reduction <add>, %12, %cst_8 [1] : vector<2x256x128xf32> to vector<2x128xf32>
    %cst_9 = arith.constant 3.906250e-03 : f32
    %14 = vector.broadcast %cst_9 : f32 to vector<2x128xf32>
    %15 = arith.mulf %13, %14 : vector<2x128xf32>
    %c2_i32 = arith.constant 2 : i32
    %16 = arith.muli %arg0, %c2_i32 : i32
    %17 = arith.index_cast %16 : i32 to index
    %c0_10 = arith.constant 0 : index
    %18 = vector.load %arg11[%17, %c0_10] : memref<8x128xf32, #tpu.memory_space<vmem>>, vector<2x128xf32>
    tpu.vector_store %arg11[%17, %c0_10], %15 {strides = array<i32>} : memref<8x128xf32, #tpu.memory_space<vmem>>, vector<2x128xf32>,
    %c0_i32_11 = arith.constant 0 : i32
    %19 = arith.cmpi eq, %arg0, %c0_i32_11 : i32
    %20 = arith.extui %19 : i1 to i32
    %c0_i32_12 = arith.constant 0 : i32
    %21 = arith.cmpi ne, %20, %c0_i32_12 : i32
    scf.if %21 {
      %c0_13 = arith.constant 0 : index
      %c0_14 = arith.constant 0 : index
      %22 = vector.load %arg11[%c0_13, %c0_14] : memref<8x128xf32, #tpu.memory_space<vmem>>, vector<8x128xf32>
      %c0_15 = arith.constant 0 : index
      %c0_16 = arith.constant 0 : index
      %23 = vector.load %arg4[%c0_15, %c0_16] : memref<128x256xf32, #tpu.memory_space<vmem>>, vector<128x256xf32>
      %cst_17 = arith.constant dense<0.000000e+00> : vector<8x256xf32>
      %24 = tpu.matmul %22, %23, %cst_17 {dimension_numbers = #tpu.dot_dimension_numbers<[1], [0], [0], [1], [0, 0, 1, 1], [], []>} : vector<8x128xf32>, vector<128x256xf32>, vector<8x256xf32> -> vector<8x256xf32>
      %c0_18 = arith.constant 0 : index
      %c0_19 = arith.constant 0 : index
      %25 = vector.load %arg5[%c0_18, %c0_19] : memref<1x256xf32, #tpu.memory_space<vmem>>, vector<1x256xf32>
      %26 = vector.broadcast %25 : vector<1x256xf32> to vector<8x256xf32>
      %27 = arith.addf %24, %26 : vector<8x256xf32>
      %c0_20 = arith.constant 0 : index
      %c0_21 = arith.constant 0 : index
      %28 = vector.load %arg6[%c0_20, %c0_21] : memref<256x128xf32, #tpu.memory_space<vmem>>, vector<256x128xf32>
      %cst_22 = arith.constant dense<0.000000e+00> : vector<8x128xf32>
      %29 = tpu.matmul %27, %28, %cst_22 {dimension_numbers = #tpu.dot_dimension_numbers<[1], [0], [0], [1], [0, 0, 1, 1], [], []>} : vector<8x256xf32>, vector<256x128xf32>, vector<8x128xf32> -> vector<8x128xf32>
      %c0_23 = arith.constant 0 : index
      %c0_24 = arith.constant 0 : index
      %30 = vector.load %arg7[%c0_23, %c0_24] : memref<1x128xf32, #tpu.memory_space<vmem>>, vector<1x128xf32>
      %31 = vector.broadcast %30 : vector<1x128xf32> to vector<8x128xf32>
      %32 = arith.addf %29, %31 : vector<8x128xf32>
      %c0_25 = arith.constant 0 : index
      %c0_26 = arith.constant 0 : index
      %33 = vector.load %arg8[%c0_25, %c0_26] : memref<128x128xf32, #tpu.memory_space<vmem>>, vector<128x128xf32>
      %cst_27 = arith.constant dense<0.000000e+00> : vector<8x128xf32>
      %34 = tpu.matmul %32, %33, %cst_27 {dimension_numbers = #tpu.dot_dimension_numbers<[1], [0], [0], [1], [0, 0, 1, 1], [], []>} : vector<8x128xf32>, vector<128x128xf32>, vector<8x128xf32> -> vector<8x128xf32>
      %c0_28 = arith.constant 0 : index
      %c0_29 = arith.constant 0 : index
      %35 = vector.load %arg9[%c0_28, %c0_29] : memref<1x128xf32, #tpu.memory_space<vmem>>, vector<1x128xf32>
      %36 = vector.broadcast %35 : vector<1x128xf32> to vector<8x128xf32>
      %37 = arith.addf %34, %36 : vector<8x128xf32>
      %38 = tpu.iota {dimensions = array<i32: 1>} : vector<8x128xi32>
      %c10_i32 = arith.constant 10 : i32
      %39 = vector.broadcast %c10_i32 : i32 to vector<8x128xi32>
      %40 = arith.cmpi slt, %38, %39 : vector<8x128xi32>
      %cst_30 = arith.constant 0xFF800000 : f32
      %41 = vector.broadcast %cst_30 : f32 to vector<8x128xf32>
      %42 = arith.select %40, %37, %41 : vector<8x128xi1>, vector<8x128xf32>
      %cst_31 = arith.constant dense<0xFF800000> : vector<8xf32>
      %43 = vector.multi_reduction <maximumf>, %42, %cst_31 [1] : vector<8x128xf32> to vector<8xf32>
      %44 = vector.shape_cast %43 : vector<8xf32> to vector<8x1xf32>
      %45 = vector.broadcast %44 : vector<8x1xf32> to vector<8x128xf32>
      %46 = arith.subf %42, %45 : vector<8x128xf32>
      %47 = math.exp %46 : vector<8x128xf32>
      %cst_32 = arith.constant dense<0.000000e+00> : vector<8xf32>
      %48 = vector.multi_reduction <add>, %47, %cst_32 [1] : vector<8x128xf32> to vector<8xf32>
      %49 = vector.shape_cast %48 : vector<8xf32> to vector<8x1xf32>
      %50 = math.log %49 : vector<8x1xf32>
      %51 = vector.broadcast %50 : vector<8x1xf32> to vector<8x128xf32>
      %52 = arith.subf %46, %51 : vector<8x128xf32>
      %c0_33 = arith.constant 0 : index
      %c0_34 = arith.constant 0 : index
      %53 = vector.load %arg10[%c0_33, %c0_34] : memref<8x128xf32, #tpu.memory_space<vmem>>, vector<8x128xf32>
      tpu.vector_store %arg10[%c0_33, %c0_34], %52 {strides = array<i32>} : memref<8x128xf32, #tpu.memory_space<vmem>>, vector<8x128xf32>,
    } else {
    }
    return
  }
  func.func @transform_0(%arg0: i32) -> (i32, i32, i32) {
    %c0_i32 = arith.constant 0 : i32
    %c0_i32_0 = arith.constant 0 : i32
    %c0_i32_1 = arith.constant 0 : i32
    return %arg0, %c0_i32, %c0_i32_0 : i32, i32, i32
  }
  func.func @transform_1(%arg0: i32) -> (i32, i32) {
    %c0_i32 = arith.constant 0 : i32
    %c0_i32_0 = arith.constant 0 : i32
    %c0_i32_1 = arith.constant 0 : i32
    return %c0_i32, %c0_i32_0 : i32, i32
  }
  func.func @transform_2(%arg0: i32) -> (i32, i32) {
    %c0_i32 = arith.constant 0 : i32
    %c0_i32_0 = arith.constant 0 : i32
    %c0_i32_1 = arith.constant 0 : i32
    return %c0_i32, %c0_i32_0 : i32, i32
  }
  func.func @transform_3(%arg0: i32) -> (i32, i32) {
    %c0_i32 = arith.constant 0 : i32
    %c0_i32_0 = arith.constant 0 : i32
    %c0_i32_1 = arith.constant 0 : i32
    return %c0_i32, %c0_i32_0 : i32, i32
  }
  func.func @transform_4(%arg0: i32) -> (i32, i32) {
    %c0_i32 = arith.constant 0 : i32
    %c0_i32_0 = arith.constant 0 : i32
    %c0_i32_1 = arith.constant 0 : i32
    return %c0_i32, %c0_i32_0 : i32, i32
  }
  func.func @transform_5(%arg0: i32) -> (i32, i32) {
    %c0_i32 = arith.constant 0 : i32
    %c0_i32_0 = arith.constant 0 : i32
    %c0_i32_1 = arith.constant 0 : i32
    return %c0_i32, %c0_i32_0 : i32, i32
  }
  func.func @transform_6(%arg0: i32) -> (i32, i32) {
    %c0_i32 = arith.constant 0 : i32
    %c0_i32_0 = arith.constant 0 : i32
    %c0_i32_1 = arith.constant 0 : i32
    return %c0_i32, %c0_i32_0 : i32, i32
  }
  func.func @transform_7(%arg0: i32) -> (i32, i32) {
    %c0_i32 = arith.constant 0 : i32
    %c0_i32_0 = arith.constant 0 : i32
    %c0_i32_1 = arith.constant 0 : i32
    return %c0_i32, %c0_i32_0 : i32, i32
  }
  func.func @transform_8(%arg0: i32) -> (i32, i32) {
    %c0_i32 = arith.constant 0 : i32
    %c0_i32_0 = arith.constant 0 : i32
    %c0_i32_1 = arith.constant 0 : i32
    return %c0_i32, %c0_i32_0 : i32, i32
  }
  func.func @transform_9(%arg0: i32) -> (i32, i32) {
    %c0_i32 = arith.constant 0 : i32
    %c0_i32_0 = arith.constant 0 : i32
    %c0_i32_1 = arith.constant 0 : i32
    return %c0_i32, %c0_i32_0 : i32, i32
  }
}

</mosaic_0001>

<bundles_post_ra>
// kernel: tpu_custom_call.1
= control target key start
LH: loop header
LB: loop body
LE: loop exit
PB: predicated region body
PF: predicated region fallthrough
CT: control target
= control target key end

     0   :  { %14 = vsyncpa [#allocation4], 0  ;;  %s1801_s0 = inlined_call_operand.vmem [shape: f32[2,256,36], index: 0, kind: input, shape index: {}]   ;;  %s1802_s1 = inlined_call_operand.hbm [shape: f32[36,128], index: 1, kind: input, shape index: {}]   ;;  %s1803_s2 = inlined_call_operand.vmem [shape: f32[1,128], index: 2, kind: input, shape index: {}]   ;;  %s1804_s3 = inlined_call_operand.vmem [shape: f32[128,256], index: 3, kind: input, shape index: {}]   ;;  %s1805_s4 = inlined_call_operand.vmem [shape: f32[1,256], index: 4, kind: input, shape index: {}]   ;;  %s1806_s5 = inlined_call_operand.vmem [shape: f32[256,128], index: 5, kind: input, shape index: {}]   ;;  %s1807_s6 = inlined_call_operand.vmem [shape: f32[1,128], index: 6, kind: input, shape index: {}]   ;;  %s1808_s7 = inlined_call_operand.vmem [shape: f32[128,128], index: 7, kind: input, shape index: {}]   ;;  %s1809_s8 = inlined_call_operand.vmem [shape: f32[1,128], index: 8, kind: input, shape index: {}]   ;;  %s1810_s9 = inlined_call_operand.hbm [shape: f32[8,128], index: 9, kind: output, shape index: {}]  }
   0x1   :  { %15 = vsyncpa [#allocation5], 0  ;;  %s22_s11 = sshll.u32 %s1802_s1, 4  ;;  %s1055_s12 = smov [#allocation3]   ;;  %s23_s11 = int_to_ptr.hbm [resolvable:$true] %s22_s11 }
   0x2   :  { %s24_s13 = sshll.u32 %s1055_s12, 4  ;;  %s1056_s14 = smov 128   ;;  %s25_s13 = int_to_ptr.vmem [resolvable:$true] %s24_s13 }
   0x3   :  { %s1057_s15 = smov 8  }
   0x4   :  { %30 = dma.hbm_to_vmem [thread:$0]  %s23_s11, 640, %s25_s13, [#allocation4], %s1056_s14, %s1056_s14, %s1057_s15  }
   0x5   :  { %1051 = dma.done.wait [#allocation4], 640  }
   0x6   :  { %1052 = vsyncadd [#allocation4], 4294966656  ;;  %vm320_vm0 = vcmask 1043456   ;;  %v122_v0 = vld [vmem:[#allocation3 + $0x20] sm:$0xf]  ;;  %v121_v1 = vld [vmem:[#allocation3 + $0x18] sm:$0xff] }
   0x7   :  { %911 = vmatpush.msk.msra.mxu0 %vm320_vm0, %v122_v0  ;;  %976 = vmatpush.msk.msra.mxu1 %vm320_vm0, %v122_v0  ;;  %v120_v2 = vld [vmem:[#allocation3 + $0x10] sm:$0xff]  ;;  %v119_v3 = vld [vmem:[#allocation3 + $0x8] sm:$0xff]  ;;  %v118_v4 = vld [vmem:[#allocation3] sm:$0xff]  ;;  %vm127_vm1 = vcmask 293888   ;;  %vm676_vm2 = vcmask 1041409  }
   0x8   :  { %978 = vmatpush.msk.msra.mxu3 %vm320_vm0, %v122_v0  ;;  %977 = vmatpush.msk.msra.mxu2 %vm320_vm0, %v122_v0  ;;  %v54_v5 = vld [vmem:[%s1801_s0] sm:$0xff]  ;;  %v75_v6 = vld [vmem:[%s1801_s0 + $0xa8] sm:$0xff]  ;;  %v76_v9 = vld [vmem:[%s1801_s0 + $0xb0] sm:$0xff] }
   0x9   :  { %336 = vmatpush.msra.mxu0 %v121_v1  ;;  %979 = vmatpush.msra.mxu1 %v121_v1  ;;  %v99_v7 = vld [vmem:[%s1801_s0 + $0x168] sm:$0xff]  ;;  %v100_v10 = vld [vmem:[%s1801_s0 + $0x170] sm:$0xff]  ;;  %v89_v11 = vld [vmem:[%s1801_s0 + $0x118] sm:$0xff] }
   0xa   :  { %981 = vmatpush.msra.mxu3 %v121_v1  ;;  %980 = vmatpush.msra.mxu2 %v121_v1  ;;  %v55_v8 = vld [vmem:[%s1801_s0 + $0x8] sm:$0xff]  ;;  %v56_v12 = vld [vmem:[%s1801_s0 + $0x10] sm:$0xff]  ;;  %v77_v13 = vld [vmem:[%s1801_s0 + $0xb8] sm:$0xff] }
   0xb   :  { %337 = vmatpush.msra.mxu0 %v120_v2  ;;  %982 = vmatpush.msra.mxu1 %v120_v2  ;;  %v101_v14 = vld [vmem:[%s1801_s0 + $0x178] sm:$0xff]  ;;  %v90_v15 = vld [vmem:[%s1801_s0 + $0x120] sm:$0xff]  ;;  %v91_v19 = vld [vmem:[%s1801_s0 + $0x128] sm:$0xff] }
   0xc   :  { %984 = vmatpush.msra.mxu3 %v120_v2  ;;  %983 = vmatpush.msra.mxu2 %v120_v2  ;;  %v57_v16 = vld [vmem:[%s1801_s0 + $0x18] sm:$0xff]  ;;  %v78_v17 = vld [vmem:[%s1801_s0 + $0xc0] sm:$0xff]  ;;  %v79_v21 = vld [vmem:[%s1801_s0 + $0xc8] sm:$0xff] }
   0xd   :  { %338 = vmatpush.msra.mxu0 %v119_v3  ;;  %985 = vmatpush.msra.mxu1 %v119_v3  ;;  %v102_v18 = vld [vmem:[%s1801_s0 + $0x180] sm:$0xff]  ;;  %v103_v22 = vld [vmem:[%s1801_s0 + $0x188] sm:$0xff]  ;;  %v92_v23 = vld [vmem:[%s1801_s0 + $0x130] sm:$0xff] }
   0xe   :  { %987 = vmatpush.msra.mxu3 %v119_v3  ;;  %986 = vmatpush.msra.mxu2 %v119_v3  ;;  %v58_v20 = vld [vmem:[%s1801_s0 + $0x20] sm:$0xff]  ;;  %v59_v24 = vld [vmem:[%s1801_s0 + $0x28] sm:$0xff]  ;;  %v80_v25 = vld [vmem:[%s1801_s0 + $0xd0] sm:$0xff] }
   0xf   :  { %339 = vmatpush.msra.mxu0 %v118_v4  ;;  %988 = vmatpush.msra.mxu1 %v118_v4  ;;  %v104_v26 = vld [vmem:[%s1801_s0 + $0x190] sm:$0xff]  ;;  %v93_v27 = vld [vmem:[%s1801_s0 + $0x138] sm:$0xff]  ;;  %v94_v31 = vld [vmem:[%s1801_s0 + $0x140] sm:$0xff] }
  0x10   :  { %912 = vmatmul.msk.f32.vlgmr.msra.gmra.mxu0 %vm127_vm1, %v54_v5  ;;  %933 = vmatmul.msk.f32.vlgmr.msra.gmra.mxu1 %vm127_vm1, %v75_v6  ;;  %v60_v28 = vld [vmem:[%s1801_s0 + $0x30] sm:$0xff]  ;;  %v81_v29 = vld [vmem:[%s1801_s0 + $0xd8] sm:$0xff]  ;;  %v82_v33 = vld [vmem:[%s1801_s0 + $0xe0] sm:$0xff] }
  0x11   :  { %990 = vmatpush.msra.mxu3 %v118_v4  ;;  %989 = vmatpush.msra.mxu2 %v118_v4  ;;  %v105_v30 = vld [vmem:[%s1801_s0 + $0x198] sm:$0xff]  ;;  %v106_v34 = vld [vmem:[%s1801_s0 + $0x1a0] sm:$0xff]  ;;  %v95_v35 = vld [vmem:[%s1801_s0 + $0x148] sm:$0xff] }
  0x12   :  { %957 = vmatmul.msk.f32.vlgmr.msra.gmra.mxu3 %vm127_vm1, %v99_v7  ;;  %947 = vmatmul.msk.f32.vlgmr.msra.gmra.mxu2 %vm127_vm1, %v89_v11  ;;  %v61_v32 = vld [vmem:[%s1801_s0 + $0x38] sm:$0xff]  ;;  %v62_v36 = vld [vmem:[%s1801_s0 + $0x40] sm:$0xff]  ;;  %v83_v37 = vld [vmem:[%s1801_s0 + $0xe8] sm:$0xff] }
  0x13   :  { %v107_v38 = vld [vmem:[%s1801_s0 + $0x1a8] sm:$0xff]  ;;  %v96_v39 = vld [vmem:[%s1801_s0 + $0x150] sm:$0xff]  ;;  %v97_v43 = vld [vmem:[%s1801_s0 + $0x158] sm:$0xff] }
  0x14   :  { %v63_v40 = vld [vmem:[%s1801_s0 + $0x48] sm:$0xff]  ;;  %v84_v41 = vld [vmem:[%s1801_s0 + $0xf0] sm:$0xff]  ;;  %v85_v45 = vld [vmem:[%s1801_s0 + $0xf8] sm:$0xff] }
  0x15   :  { %v108_v42 = vld [vmem:[%s1801_s0 + $0x1b0] sm:$0xff]  ;;  %v109_v46 = vld [vmem:[%s1801_s0 + $0x1b8] sm:$0xff]  ;;  %v98_v47 = vld [vmem:[%s1801_s0 + $0x160] sm:$0xff] }
  0x16   :  { %v64_v44 = vld [vmem:[%s1801_s0 + $0x50] sm:$0xff]  ;;  %v65_v48 = vld [vmem:[%s1801_s0 + $0x58] sm:$0xff]  ;;  %v86_v49 = vld [vmem:[%s1801_s0 + $0x100] sm:$0xff] }
  0x17   :  { %v110_v50 = vld [vmem:[%s1801_s0 + $0x1c0] sm:$0xff]  ;;  %v87_v52 = vld [vmem:[%s1801_s0 + $0x108] sm:$0xff]  ;;  %v88_v55 = vld [vmem:[%s1801_s0 + $0x110] sm:$0xff] }
  0x18   :  { %913 = vmatmul.msk.f32.gmra.mxu0 %vm127_vm1, %v55_v8  ;;  %934 = vmatmul.msk.f32.gmra.mxu1 %vm127_vm1, %v76_v9  ;;  %v66_v51 = vld [vmem:[%s1801_s0 + $0x60] sm:$0xff]  ;;  %v111_v53 = vld [vmem:[%s1801_s0 + $0x1c8] sm:$0xff]  ;;  %v112_v56 = vld [vmem:[%s1801_s0 + $0x1d0] sm:$0xff] }
  0x19   :  { %v67_v54 = vld [vmem:[%s1801_s0 + $0x68] sm:$0xff]  ;;  %v68_v57 = vld [vmem:[%s1801_s0 + $0x70] sm:$0xff]  ;;  %v113_v58 = vld [vmem:[%s1801_s0 + $0x1d8] sm:$0xff] }
  0x1a   :  { %958 = vmatmul.msk.f32.gmra.mxu3 %vm127_vm1, %v100_v10  ;;  %948 = vmatmul.msk.f32.gmra.mxu2 %vm127_vm1, %v90_v15  ;;  %v69_v59 = vld [vmem:[%s1801_s0 + $0x78] sm:$0xff]  ;;  %v114_v60 = vld [vmem:[%s1801_s0 + $0x1e0] sm:$0xff]  ;;  %v115_v0 = vld [vmem:[%s1801_s0 + $0x1e8] sm:$0xff] }
  0x1b   :  { %v70_v63 = vld [vmem:[%s1801_s0 + $0x80] sm:$0xff]  ;;  %v71_v5 = vld [vmem:[%s1801_s0 + $0x88] sm:$0xff]  ;;  %v116_v8 = vld [vmem:[%s1801_s0 + $0x1f0] sm:$0xff] }
  0x1c   :  { %v1348_v1 = vld [vmem:[%s1803_s2] ss:$0 sm:$0xff] }
  0x20   :  { %914 = vmatmul.msk.f32.gmra.mxu0 %vm127_vm1, %v56_v12  ;;  %935 = vmatmul.msk.f32.gmra.mxu1 %vm127_vm1, %v77_v13 }
  0x22   :  { %959 = vmatmul.msk.f32.gmra.mxu3 %vm127_vm1, %v101_v14  ;;  %949 = vmatmul.msk.f32.gmra.mxu2 %vm127_vm1, %v91_v19  ;;  %v72_v14 = vld [vmem:[%s1801_s0 + $0x90] sm:$0xff] }
  0x28   :  { %915 = vmatmul.msk.f32.gmra.mxu0 %vm127_vm1, %v57_v16  ;;  %936 = vmatmul.msk.f32.gmra.mxu1 %vm127_vm1, %v78_v17  ;;  %v117_v17 = vld [vmem:[%s1801_s0 + $0x1f8] sm:$0xff] }
  0x2a   :  { %960 = vmatmul.msk.f32.gmra.mxu3 %vm127_vm1, %v102_v18  ;;  %950 = vmatmul.msk.f32.gmra.mxu2 %vm127_vm1, %v92_v23 }
  0x30   :  { %916 = vmatmul.msk.f32.gmra.mxu0 %vm127_vm1, %v58_v20  ;;  %937 = vmatmul.msk.f32.gmra.mxu1 %vm127_vm1, %v79_v21 }
  0x32   :  { %961 = vmatmul.msk.f32.gmra.mxu3 %vm127_vm1, %v103_v22  ;;  %951 = vmatmul.msk.f32.gmra.mxu2 %vm127_vm1, %v93_v27  ;;  %v73_v22 = vld [vmem:[%s1801_s0 + $0x98] sm:$0xff] }
  0x38   :  { %917 = vmatmul.msk.f32.gmra.mxu0 %vm127_vm1, %v59_v24  ;;  %938 = vmatmul.msk.f32.gmra.mxu1 %vm127_vm1, %v80_v25 }
  0x3a   :  { %962 = vmatmul.msk.f32.gmra.mxu3 %vm127_vm1, %v104_v26  ;;  %952 = vmatmul.msk.f32.gmra.mxu2 %vm127_vm1, %v94_v31 }
  0x40   :  { %918 = vmatmul.msk.f32.gmra.mxu0 %vm127_vm1, %v60_v28  ;;  %939 = vmatmul.msk.f32.gmra.mxu1 %vm127_vm1, %v81_v29 }
  0x42   :  { %963 = vmatmul.msk.f32.gmra.mxu3 %vm127_vm1, %v105_v30  ;;  %953 = vmatmul.msk.f32.gmra.mxu2 %vm127_vm1, %v95_v35  ;;  %v74_v30 = vld [vmem:[%s1801_s0 + $0xa0] sm:$0xff] }
  0x48   :  { %919 = vmatmul.msk.f32.gmra.mxu0 %vm127_vm1, %v61_v32  ;;  %940 = vmatmul.msk.f32.gmra.mxu1 %vm127_vm1, %v82_v33 }
  0x4a   :  { %964 = vmatmul.msk.f32.gmra.mxu3 %vm127_vm1, %v106_v34  ;;  %954 = vmatmul.msk.f32.gmra.mxu2 %vm127_vm1, %v96_v39 }
  0x50   :  { %920 = vmatmul.msk.f32.gmra.mxu0 %vm127_vm1, %v62_v36  ;;  %941 = vmatmul.msk.f32.gmra.mxu1 %vm127_vm1, %v83_v37 }
  0x52   :  { %965 = vmatmul.msk.f32.gmra.mxu3 %vm127_vm1, %v107_v38  ;;  %955 = vmatmul.msk.f32.gmra.mxu2 %vm127_vm1, %v97_v43 }
  0x58   :  { %921 = vmatmul.msk.f32.gmra.mxu0 %vm127_vm1, %v63_v40  ;;  %942 = vmatmul.msk.f32.gmra.mxu1 %vm127_vm1, %v84_v41 }
  0x5a   :  { %966 = vmatmul.msk.f32.gmra.mxu3 %vm127_vm1, %v108_v42  ;;  %956 = vmatmul.msk.f32.gmra.mxu2 %vm127_vm1, %v98_v47 }
  0x60   :  { %922 = vmatmul.msk.f32.gmra.mxu0 %vm127_vm1, %v64_v44  ;;  %943 = vmatmul.msk.f32.gmra.mxu1 %vm127_vm1, %v85_v45 }
  0x62   :  { %967 = vmatmul.msk.f32.gmra.mxu3 %vm127_vm1, %v109_v46 }
  0x68   :  { %923 = vmatmul.msk.f32.gmra.mxu0 %vm127_vm1, %v65_v48  ;;  %944 = vmatmul.msk.f32.gmra.mxu1 %vm127_vm1, %v86_v49 }
  0x6a   :  { %968 = vmatmul.msk.f32.gmra.mxu3 %vm127_vm1, %v110_v50 }
  0x70   :  { %924 = vmatmul.msk.f32.gmra.mxu0 %vm127_vm1, %v66_v51  ;;  %945 = vmatmul.msk.f32.gmra.mxu1 %vm127_vm1, %v87_v52 }
  0x72   :  { %969 = vmatmul.msk.f32.gmra.mxu3 %vm127_vm1, %v111_v53 }
  0x78   :  { %925 = vmatmul.msk.f32.gmra.mxu0 %vm127_vm1, %v67_v54  ;;  %946 = vmatmul.msk.f32.gmra.mxu1 %vm127_vm1, %v88_v55 }
  0x7a   :  { %970 = vmatmul.msk.f32.gmra.mxu3 %vm127_vm1, %v112_v56 }
  0x80   :  { %926 = vmatmul.msk.f32.gmra.mxu0 %vm127_vm1, %v68_v57 }
  0x82   :  { %971 = vmatmul.msk.f32.gmra.mxu3 %vm127_vm1, %v113_v58 }
  0x88   :  { %927 = vmatmul.msk.f32.gmra.mxu0 %vm127_vm1, %v69_v59 }
  0x8a   :  { %972 = vmatmul.msk.f32.gmra.mxu3 %vm127_vm1, %v114_v60 }
  0x8d   :  { %v341_v61 = vpop.f32.mrf.mxu0  ;;  %v1337_v62 = vpop.f32.mrf.mxu1 }
  0x8e   :  { %v342_v2 = vadd.f32 %v1348_v1, %v341_v61 }
  0x90   :  { %928 = vmatmul.msk.f32.gmra.mxu0 %vm127_vm1, %v70_v63  ;;  %v533_v9 = vmax.f32 %v342_v2, 0.0 }
  0x92   :  { %973 = vmatmul.msk.f32.gmra.mxu3 %vm127_vm1, %v115_v0  ;;  %v715_v0 = vld [vmem:[%s1804_s3 + $0xf0] sm:$0xff] }
  0x93   :  { %723 = vmatpush.msrb.mxu1 %v715_v0 }
  0x95   :  { %v344_v3 = vpop.f32.mrf.mxu0  ;;  %v1353_v4 = vpop.f32.mrf.mxu1 }
  0x96   :  { %v345_v6 = vadd.f32 %v1348_v1, %v344_v3  ;;  %v1359_v7 = vpop.f32.mrf.mxu3  ;;  %v1388_v26 = vpop.f32.mrf.mxu2 }
  0x98   :  { %v534_v10 = vmax.f32 %v345_v6, 0.0  ;;  %929 = vmatmul.msk.f32.gmra.mxu0 %vm127_vm1, %v71_v5 }
  0x9a   :  { %v597_v11 = vadd.f32 %v534_v10, %v533_v9  ;;  %974 = vmatmul.msk.f32.gmra.mxu3 %vm127_vm1, %v116_v8 }
  0x9d   :  { %v347_v12 = vpop.f32.mrf.mxu0  ;;  %v1366_v13 = vpop.f32.mrf.mxu1 }
  0x9e   :  { %v348_v15 = vadd.f32 %v1348_v1, %v347_v12  ;;  %v1372_v16 = vpop.f32.mrf.mxu3  ;;  %v1399_v35 = vpop.f32.mrf.mxu2 }
  0xa0   :  { %v535_v18 = vmax.f32 %v348_v15, 0.0  ;;  %930 = vmatmul.msk.f32.gmra.mxu0 %vm127_vm1, %v72_v14  ;;  %v713_v15 = vld [vmem:[%s1804_s3 + $0xe0] sm:$0xff] }
  0xa1   :  { %724 = vmatpush.msrb.mxu1 %v713_v15 }
  0xa2   :  { %v598_v19 = vadd.f32 %v597_v11, %v535_v18  ;;  %975 = vmatmul.msk.f32.gmra.mxu3 %vm127_vm1, %v117_v17 }
  0xa5   :  { %v350_v20 = vpop.f32.mrf.mxu0  ;;  %v1379_v21 = vpop.f32.mrf.mxu1 }
  0xa6   :  { %v351_v23 = vadd.f32 %v1348_v1, %v350_v20  ;;  %v1385_v24 = vpop.f32.mrf.mxu3  ;;  %v452_v42 = vpop.f32.mrf.mxu2 }
  0xa8   :  { %v536_v25 = vmax.f32 %v351_v23, 0.0  ;;  %931 = vmatmul.msk.f32.gmra.mxu0 %vm127_vm1, %v73_v22  ;;  %v711_v22 = vld [vmem:[%s1804_s3 + $0xd0] sm:$0xff]  ;;  %v709_v23 = vld [vmem:[%s1804_s3 + $0xc0] sm:$0xff] }
  0xa9   :  { %725 = vmatpush.msrb.mxu1 %v711_v22 }
  0xaa   :  { %v599_v27 = vadd.f32 %v598_v19, %v536_v25 }
  0xab   :  { %726 = vmatpush.msrb.mxu1 %v709_v23 }
  0xad   :  { %v353_v28 = vpop.f32.mrf.mxu0  ;;  %v1390_v29 = vpop.f32.mrf.mxu1 }
  0xae   :  { %v354_v31 = vadd.f32 %v1348_v1, %v353_v28  ;;  %v1396_v32 = vpop.f32.mrf.mxu3  ;;  %v455_v53 = vpop.f32.mrf.mxu2 }
  0xb0   :  { %v537_v33 = vmax.f32 %v354_v31, 0.0  ;;  %932 = vmatmul.msk.f32.gmra.mxu0 %vm127_vm1, %v74_v30 }
  0xb2   :  { %v600_v34 = vadd.f32 %v599_v27, %v537_v33 }
  0xb5   :  { %v356_v36 = vpop.f32.mrf.mxu0  ;;  %v1401_v37 = vpop.f32.mrf.mxu1 }
  0xb6   :  { %v357_v38 = vadd.f32 %v1348_v1, %v356_v36  ;;  %v1404_v39 = vpop.f32.mrf.mxu3  ;;  %v458_v61 = vpop.f32.mrf.mxu2 }
  0xb8   :  { %v538_v40 = vmax.f32 %v357_v38, 0.0 }
  0xba   :  { %v601_v41 = vadd.f32 %v600_v34, %v538_v40 }
  0xbd   :  { %v359_v43 = vpop.f32.mrf.mxu0  ;;  %v1406_v44 = vpop.f32.mrf.mxu1 }
  0xbe   :  { %v360_v45 = vadd.f32 %v1348_v1, %v359_v43  ;;  %v1409_v46 = vpop.f32.mrf.mxu3  ;;  %v461_v10 = vpop.f32.mrf.mxu2 }
  0xc0   :  { %v539_v47 = vmax.f32 %v360_v45, 0.0 }
  0xc2   :  { %v602_v48 = vadd.f32 %v601_v41, %v539_v47  ;;  %v447_v41 = vadd.f32 %v1348_v1, %v1388_v26  ;;  %v707_v26 = vld [vmem:[%s1804_s3 + $0xb0] sm:$0xff] }
  0xc3   :  { %727 = vmatpush.msrb.mxu1 %v707_v26 }
  0xc5   :  { %v362_v49 = vpop.f32.mrf.mxu0  ;;  %v1411_v50 = vpop.f32.mrf.mxu1 }
  0xc6   :  { %v363_v51 = vadd.f32 %v1348_v1, %v362_v49  ;;  %v1414_v52 = vpop.f32.mrf.mxu3  ;;  %v464_v17 = vpop.f32.mrf.mxu2 }
  0xc8   :  { %v540_v54 = vmax.f32 %v363_v51, 0.0 }
  0xca   :  { %v603_v55 = vadd.f32 %v602_v48, %v540_v54  ;;  %v450_v48 = vadd.f32 %v1348_v1, %v1399_v35  ;;  %v568_v54 = vmax.f32 %v447_v41, 0.0  ;;  %v459_v35 = vadd.f32 %v1348_v1, %v458_v61 }
  0xcc   :  { %v572_v22 = vmax.f32 %v459_v35, 0.0  ;;  %v712_v35 = vld [vmem:[%s1804_s3 + $0xd8] sm:$0xff] }
  0xcd   :  { %v365_v56 = vpop.f32.mrf.mxu0  ;;  %v1416_v57 = vpop.f32.mrf.mxu1 }
  0xce   :  { %v366_v58 = vadd.f32 %v1348_v1, %v365_v56  ;;  %v1419_v59 = vpop.f32.mrf.mxu3  ;;  %v467_v33 = vpop.f32.mrf.mxu2 }
  0xcf   :  { %v468_v23 = vadd.f32 %v1348_v1, %v467_v33  ;;  %v477_v33 = vadd.f32 %v1348_v1, %v1359_v7  ;;  %v483_v7 = vadd.f32 %v1348_v1, %v1385_v24 }
  0xd0   :  { %v541_v60 = vmax.f32 %v366_v58, 0.0  ;;  %v569_v58 = vmax.f32 %v450_v48, 0.0 }
  0xd1   :  { %v575_v41 = vmax.f32 %v468_v23, 0.0  ;;  %v489_v23 = vadd.f32 %v1348_v1, %v1404_v39  ;;  %v706_v39 = vld [vmem:[%s1804_s3 + $0xa8] sm:$0xff] }
  0xd2   :  { %v604_v63 = vadd.f32 %v603_v55, %v541_v60  ;;  %v453_v55 = vadd.f32 %v1348_v1, %v452_v42  ;;  %v456_v60 = vadd.f32 %v1348_v1, %v455_v53  ;;  %v462_v42 = vadd.f32 %v1348_v1, %v461_v10 }
  0xd4   :  { %v571_v15 = vmax.f32 %v456_v60, 0.0 }
  0xd5   :  { %v368_v2 = vpop.f32.mrf.mxu0  ;;  %v1424_v3 = vpop.f32.mrf.mxu1 }
  0xd6   :  { %v369_v5 = vadd.f32 %v1348_v1, %v368_v2  ;;  %v1427_v6 = vpop.f32.mrf.mxu3  ;;  %v470_v51 = vpop.f32.mrf.mxu2  ;;  %v570_v2 = vmax.f32 %v453_v55, 0.0  ;;  %v480_v55 = vadd.f32 %v1348_v1, %v1372_v16  ;;  %v714_v16 = vld [vmem:[%s1804_s3 + $0xe8] sm:$0xff] }
  0xd8   :  { %v542_v8 = vmax.f32 %v369_v5, 0.0 }
  0xda   :  { %v1429_v9 = vadd.f32 %v604_v63, %v542_v8 }
  0xdd   :  { %v1431_v11 = vpop.f32.mrf.mxu0  ;;  %v1433_v12 = vpop.f32.mrf.mxu1 }
  0xde   :  { %v1435_v14 = vpop.f32.mrf.mxu3 }
  0xe5   :  { %v1440_v18 = vpop.f32.mrf.mxu0  ;;  %v437_v19 = vpop.f32.mrf.mxu1 }
  0xe6   :  { %v1442_v20 = vpop.f32.mrf.mxu3  ;;  %v438_v28 = vadd.f32 %v1348_v1, %v437_v19  ;;  %v465_v19 = vadd.f32 %v1348_v1, %v464_v17 }
  0xe8   :  { %v565_v34 = vmax.f32 %v438_v28, 0.0  ;;  %v473_v28 = vpop.f32.mrf.mxu2 }
  0xed   :  { %v1450_v25 = vpop.f32.mrf.mxu0  ;;  %v440_v27 = vpop.f32.mrf.mxu1 }
  0xee   :  { %v441_v30 = vadd.f32 %v1348_v1, %v440_v27  ;;  %v1454_v31 = vpop.f32.mrf.mxu3 }
  0xf0   :  { %v566_v36 = vmax.f32 %v441_v30, 0.0  ;;  %v573_v30 = vmax.f32 %v462_v42, 0.0  ;;  %v701_v42 = vld [vmem:[%s1804_s3 + $0x80] sm:$0xff] }
  0xf2   :  { %v634_v43 = vadd.f32 %v566_v36, %v565_v34  ;;  %v574_v34 = vmax.f32 %v465_v19, 0.0  ;;  %v710_v19 = vld [vmem:[%s1804_s3 + $0xc8] sm:$0xff] }
  0xf5   :  { %v1456_v38 = vpop.f32.mrf.mxu0  ;;  %v443_v40 = vpop.f32.mrf.mxu1 }
  0xf6   :  { %v444_v45 = vadd.f32 %v1348_v1, %v443_v40  ;;  %v1461_v47 = vpop.f32.mrf.mxu3  ;;  %v471_v40 = vadd.f32 %v1348_v1, %v470_v51  ;;  %v716_v51 = vld [vmem:[%s1804_s3 + $0xf8] sm:$0xff] }
  0xf7   :  { %743 = vmatpush.msrb.mxu2 %v716_v51 }
  0xf8   :  { %v567_v49 = vmax.f32 %v444_v45, 0.0  ;;  %v474_v45 = vadd.f32 %v1348_v1, %v473_v28  ;;  %v576_v48 = vmax.f32 %v471_v40, 0.0  ;;  %v699_v28 = vld [vmem:[%s1804_s3 + $0x70] sm:$0xff]  ;;  %v372_v40 = vadd.f32 %v1348_v1, %v1431_v11 }
  0xf9   :  { %744 = vmatpush.msrb.mxu2 %v714_v16  ;;  %v378_v11 = vadd.f32 %v1348_v1, %v1450_v25 }
  0xfa   :  { %v635_v56 = vadd.f32 %v634_v43, %v567_v49 }
  0xfb   :  { %745 = vmatpush.msrb.mxu2 %v712_v35  ;;  %v545_v16 = vmax.f32 %v378_v11, 0.0 }
  0xfc   :  { %v636_v63 = vadd.f32 %v635_v56, %v568_v54  ;;  %v577_v54 = vmax.f32 %v474_v45, 0.0  ;;  %v495_v45 = vadd.f32 %v1348_v1, %v1414_v52 }
  0xfd   :  { %v1470_v0 = vpop.f32.mrf.mxu0  ;;  %746 = vmatpush.msrb.mxu2 %v710_v19 }
  0xfe   :  { %v637_v5 = vadd.f32 %v636_v63, %v569_v58  ;;  %v1473_v8 = vpop.f32.mrf.mxu3  ;;  %v705_v58 = vld [vmem:[%s1804_s3 + $0xa0] sm:$0xff]  ;;  %v578_v63 = vmax.f32 %v477_v33, 0.0  ;;  %v498_v33 = vadd.f32 %v1348_v1, %v1419_v59  ;;  %v384_v25 = vadd.f32 %v1348_v1, %v1470_v0 }
  0xff   :  { %728 = vmatpush.msrb.mxu1 %v705_v58  ;;  %v381_v58 = vadd.f32 %v1348_v1, %v1456_v38  ;;  %v513_v0 = vadd.f32 %v1348_v1, %v1461_v47 }
 0x100   :  { %v638_v53 = vadd.f32 %v637_v5, %v570_v2  ;;  %v703_v2 = vld [vmem:[%s1804_s3 + $0x90] sm:$0xff]  ;;  %v579_v5 = vmax.f32 %v480_v55, 0.0  ;;  %v584_v55 = vmax.f32 %v495_v45, 0.0 }
 0x101   :  { %729 = vmatpush.msrb.mxu1 %v703_v2  ;;  %v546_v38 = vmax.f32 %v381_v58, 0.0 }
 0x102   :  { %v639_v27 = vadd.f32 %v638_v53, %v571_v15  ;;  %v486_v15 = vadd.f32 %v1348_v1, %v1396_v32  ;;  %v708_v32 = vld [vmem:[%s1804_s3 + $0xb8] sm:$0xff] }
 0x103   :  { %730 = vmatpush.msrb.mxu1 %v701_v42  ;;  %747 = vmatpush.msrb.mxu2 %v708_v32  ;;  %v510_v42 = vadd.f32 %v1348_v1, %v1454_v31 }
 0x104   :  { %v640_v36 = vadd.f32 %v639_v27, %v572_v22  ;;  %v580_v22 = vmax.f32 %v483_v7, 0.0  ;;  %v504_v7 = vadd.f32 %v1348_v1, %v1435_v14 }
 0x105   :  { %v1479_v61 = vpop.f32.mrf.mxu0  ;;  %731 = vmatpush.msrb.mxu1 %v699_v28  ;;  %748 = vmatpush.msrb.mxu2 %v706_v39  ;;  %v516_v28 = vadd.f32 %v1348_v1, %v1473_v8  ;;  %v590_v39 = vmax.f32 %v513_v0, 0.0 }
 0x106   :  { %v641_v43 = vadd.f32 %v640_v36, %v573_v30  ;;  %v1482_v10 = vpop.f32.mrf.mxu3  ;;  %v581_v30 = vmax.f32 %v486_v15, 0.0  ;;  %v387_v14 = vadd.f32 %v1348_v1, %v1479_v61 }
 0x107   :  { %v591_v8 = vmax.f32 %v516_v28, 0.0  ;;  %v695_v28 = vld [vmem:[%s1804_s3 + $0x50] sm:$0xff] }
 0x108   :  { %v642_v17 = vadd.f32 %v641_v43, %v574_v34  ;;  %v492_v34 = vadd.f32 %v1348_v1, %v1409_v46  ;;  %v582_v43 = vmax.f32 %v489_v23, 0.0  ;;  %v548_v31 = vmax.f32 %v387_v14, 0.0  ;;  %v700_v14 = vld [vmem:[%s1804_s3 + $0x78] sm:$0xff] }
 0x10a   :  { %v643_v49 = vadd.f32 %v642_v17, %v575_v41  ;;  %v583_v46 = vmax.f32 %v492_v34, 0.0 }
 0x10c   :  { %v644_v56 = vadd.f32 %v643_v49, %v576_v48  ;;  %v375_v48 = vadd.f32 %v1348_v1, %v1440_v18 }
 0x10d   :  { %v1494_v60 = vpop.f32.mrf.mxu0 }
 0x10e   :  { %v645_v26 = vadd.f32 %v644_v56, %v577_v54  ;;  %v1515_v53 = vpop.f32.mrf.mxu3  ;;  %v543_v54 = vmax.f32 %v372_v40, 0.0  ;;  %v501_v56 = vadd.f32 %v1348_v1, %v1427_v6  ;;  %v544_v52 = vmax.f32 %v375_v48, 0.0 }
 0x10f   :  { %v507_v6 = vadd.f32 %v1348_v1, %v1442_v20  ;;  %v390_v20 = vadd.f32 %v1348_v1, %v1494_v60  ;;  %v519_v40 = vadd.f32 %v1348_v1, %v1482_v10  ;;  %v522_v47 = vadd.f32 %v1348_v1, %v1515_v53 }
 0x110   :  { %v646_v24 = vadd.f32 %v645_v26, %v578_v63  ;;  %v585_v63 = vmax.f32 %v498_v33, 0.0  ;;  %v606_v26 = vadd.f32 %v1429_v9, %v543_v54  ;;  %v586_v35 = vmax.f32 %v501_v56, 0.0 }
 0x111   :  { %v588_v23 = vmax.f32 %v507_v6, 0.0  ;;  %v549_v45 = vmax.f32 %v390_v20, 0.0  ;;  %v592_v11 = vmax.f32 %v519_v40, 0.0  ;;  %v593_v53 = vmax.f32 %v522_v47, 0.0 }
 0x112   :  { %v647_v27 = vadd.f32 %v646_v24, %v579_v5  ;;  %v607_v15 = vadd.f32 %v606_v26, %v544_v52  ;;  %v587_v24 = vmax.f32 %v504_v7, 0.0  ;;  %v405_v7 = vadd.f32 %v1348_v1, %v1337_v62 }
 0x113   :  { %v408_v62 = vadd.f32 %v1348_v1, %v1353_v4  ;;  %v697_v4 = vld [vmem:[%s1804_s3 + $0x60] sm:$0xff]  ;;  %v420_v47 = vadd.f32 %v1348_v1, %v1401_v37 }
 0x114   :  { %v648_v36 = vadd.f32 %v647_v27, %v580_v22  ;;  %v608_v19 = vadd.f32 %v607_v15, %v545_v16  ;;  %v547_v22 = vmax.f32 %v384_v25, 0.0  ;;  %v704_v16 = vld [vmem:[%s1804_s3 + $0x98] sm:$0xff]  ;;  %732 = vmatpush.msrb.mxu1 %v697_v4 }
 0x115   :  { %v392_v41 = vpop.f32.mrf.mxu0  ;;  %749 = vmatpush.msrb.mxu2 %v704_v16  ;;  %v555_v20 = vmax.f32 %v408_v62, 0.0  ;;  %v772_v62 = vld [vmem:[%s1806_s5 + $0x48] sm:$0xff]  ;;  %v790_v4 = vld [vmem:[%s1806_s5 + $0xd8] sm:$0xff] }
 0x116   :  { %v649_v17 = vadd.f32 %v648_v36, %v581_v30  ;;  %v524_v18 = vpop.f32.mrf.mxu3  ;;  %v609_v32 = vadd.f32 %v608_v19, %v546_v38  ;;  %v589_v30 = vmax.f32 %v510_v42, 0.0  ;;  %v393_v61 = vadd.f32 %v1348_v1, %v392_v41  ;;  %733 = vmatpush.msrb.mxu1 %v695_v28 }
 0x117   :  { %v525_v10 = vadd.f32 %v1348_v1, %v524_v18  ;;  %v411_v42 = vadd.f32 %v1348_v1, %v1366_v13  ;;  %v414_v13 = vadd.f32 %v1348_v1, %v1379_v21  ;;  %v693_v21 = vld [vmem:[%s1804_s3 + $0x40] sm:$0xff] }
 0x118   :  { %v650_v49 = vadd.f32 %v649_v17, %v582_v43  ;;  %v610_v36 = vadd.f32 %v609_v32, %v547_v22  ;;  %v550_v41 = vmax.f32 %v393_v61, 0.0  ;;  %734 = vmatpush.msrb.mxu1 %v693_v21 }
 0x119   :  { %v556_v32 = vmax.f32 %v411_v42, 0.0  ;;  %v557_v40 = vmax.f32 %v414_v13, 0.0  ;;  %v771_v42 = vld [vmem:[%s1806_s5 + $0x40] sm:$0xff]  ;;  %v789_v13 = vld [vmem:[%s1806_s5 + $0xd0] sm:$0xff] }
 0x11a   :  { %v651_v51 = vadd.f32 %v650_v49, %v583_v46  ;;  %v1058_v46 = vmov 0.0   ;;  %v611_v33 = vadd.f32 %v610_v36, %v548_v31  ;;  %v417_v31 = vadd.f32 %v1348_v1, %v1390_v29  ;;  %v691_v29 = vld [vmem:[%s1804_s3 + $0x30] sm:$0xff] }
 0x11b   :  { %53 = vst [vmem:[#allocation2] sm:$0xff] %v1058_v46  ;;  %735 = vmatpush.msrb.mxu1 %v691_v29  ;;  %v692_v46 = vld [vmem:[%s1804_s3 + $0x38] sm:$0xff]  ;;  %v785_v29 = vld [vmem:[%s1806_s5 + $0xb0] sm:$0xff] }
 0x11c   :  { %v652_v59 = vadd.f32 %v651_v51, %v584_v55  ;;  %v612_v55 = vadd.f32 %v611_v33, %v549_v45  ;;  %v689_v45 = vld [vmem:[%s1804_s3 + $0x20] sm:$0xff]  ;;  %v777_v33 = vld [vmem:[%s1806_s5 + $0x70] sm:$0xff] }
 0x11d   :  { %v395_v2 = vpop.f32.mrf.mxu0  ;;  %736 = vmatpush.msrb.mxu1 %v689_v45 }
 0x11e   :  { %v653_v5 = vadd.f32 %v652_v59, %v585_v63  ;;  %v527_v60 = vpop.f32.mrf.mxu3  ;;  %v396_v48 = vadd.f32 %v1348_v1, %v395_v2  ;;  %v613_v58 = vadd.f32 %v612_v55, %v550_v41  ;;  %v594_v59 = vmax.f32 %v525_v10, 0.0  ;;  %v688_v10 = vld [vmem:[%s1804_s3 + $0x18] sm:$0xff]  ;;  %v776_v55 = vld [vmem:[%s1806_s5 + $0x68] sm:$0xff] }
 0x11f   :  { %v528_v18 = vadd.f32 %v1348_v1, %v527_v60  ;;  %v778_v60 = vld [vmem:[%s1806_s5 + $0x78] sm:$0xff]  ;;  %v559_v41 = vmax.f32 %v420_v47, 0.0  ;;  %v765_v47 = vld [vmem:[%s1806_s5 + $0x10] sm:$0xff] }
 0x120   :  { %v654_v9 = vadd.f32 %v653_v5, %v586_v35  ;;  %v551_v51 = vmax.f32 %v396_v48, 0.0  ;;  %v702_v5 = vld [vmem:[%s1804_s3 + $0x88] sm:$0xff]  ;;  %v423_v48 = vadd.f32 %v1348_v1, %v1406_v44  ;;  %799 = vmatpush.msrb.mxu3 %v778_v60 }
 0x121   :  { %750 = vmatpush.msrb.mxu2 %v702_v5  ;;  %v595_v19 = vmax.f32 %v528_v18, 0.0  ;;  %v690_v44 = vld [vmem:[%s1804_s3 + $0x28] sm:$0xff]  ;;  %v794_v5 = vld [vmem:[%s1806_s5 + $0xf8] sm:$0xff] }
 0x122   :  { %v655_v27 = vadd.f32 %v654_v9, %v587_v24  ;;  %v614_v2 = vadd.f32 %v613_v58, %v551_v51  ;;  %v554_v24 = vmax.f32 %v405_v7, 0.0  ;;  %800 = vmatpush.msrb.mxu3 %v777_v33  ;;  %v686_v58 = vld [vmem:[%s1804_s3 + $0x8] sm:$0xff]  ;;  %v432_v7 = vadd.f32 %v1348_v1, %v1424_v3  ;;  %v773_v3 = vld [vmem:[%s1806_s5 + $0x50] sm:$0xff]  ;;  %v783_v33 = vld [vmem:[%s1806_s5 + $0xa0] sm:$0xff] }
 0x123   :  { %751 = vmatpush.msrb.mxu2 %v700_v14  ;;  %v764_v60 = vld [vmem:[%s1806_s5 + $0x8] sm:$0xff] }
 0x124   :  { %v656_v34 = vadd.f32 %v655_v27, %v588_v23  ;;  %v698_v23 = vld [vmem:[%s1804_s3 + $0x68] sm:$0xff]  ;;  %801 = vmatpush.msrb.mxu3 %v776_v55 }
 0x125   :  { %v398_v43 = vpop.f32.mrf.mxu0  ;;  %752 = vmatpush.msrb.mxu2 %v698_v23  ;;  %v769_v23 = vld [vmem:[%s1806_s5 + $0x30] sm:$0xff]  ;;  %v852_v55 = vld [vmem:[%s1808_s7 + $0x68] sm:$0xff] }
 0x126   :  { %v657_v17 = vadd.f32 %v656_v34, %v589_v30  ;;  %v399_v54 = vadd.f32 %v1348_v1, %v398_v43  ;;  %v530_v6 = vpop.f32.mrf.mxu3  ;;  %v696_v30 = vld [vmem:[%s1804_s3 + $0x58] sm:$0xff] }
 0x127   :  { %v531_v0 = vadd.f32 %v1348_v1, %v530_v6  ;;  %753 = vmatpush.msrb.mxu2 %v696_v30  ;;  %v788_v30 = vld [vmem:[%s1806_s5 + $0xc8] sm:$0xff] }
 0x128   :  { %v658_v49 = vadd.f32 %v657_v17, %v590_v39  ;;  %v552_v63 = vmax.f32 %v399_v54, 0.0  ;;  %v694_v39 = vld [vmem:[%s1804_s3 + $0x48] sm:$0xff]  ;;  %v558_v17 = vmax.f32 %v417_v31, 0.0  ;;  %v426_v54 = vadd.f32 %v1348_v1, %v1411_v50  ;;  %v767_v31 = vld [vmem:[%s1806_s5 + $0x20] sm:$0xff] }
 0x129   :  { %v596_v36 = vmax.f32 %v531_v0, 0.0  ;;  %754 = vmatpush.msrb.mxu2 %v694_v39  ;;  %v429_v50 = vadd.f32 %v1348_v1, %v1416_v57  ;;  %v775_v57 = vld [vmem:[%s1806_s5 + $0x60] sm:$0xff] }
 0x12a   :  { %v659_v56 = vadd.f32 %v658_v49, %v591_v8  ;;  %v615_v15 = vadd.f32 %v614_v2, %v552_v63  ;;  %v687_v49 = vld [vmem:[%s1804_s3 + $0x10] sm:$0xff]  ;;  %v561_v63 = vmax.f32 %v426_v54, 0.0  ;;  %802 = vmatpush.msrb.mxu3 %v775_v57  ;;  %v779_v54 = vld [vmem:[%s1806_s5 + $0x80] sm:$0xff] }
 0x12b   :  { %755 = vmatpush.msrb.mxu2 %v692_v46  ;;  %737 = vmatpush.msrb.mxu1 %v687_v49  ;;  %v562_v16 = vmax.f32 %v429_v50, 0.0  ;;  %v782_v49 = vld [vmem:[%s1806_s5 + $0x98] sm:$0xff]  ;;  %v849_v50 = vld [vmem:[%s1808_s7 + $0x50] sm:$0xff] }
 0x12c   :  { %v660_v52 = vadd.f32 %v659_v56, %v592_v11  ;;  %v685_v56 = vld [vmem:[%s1804_s3] sm:$0xff] }
 0x12d   :  { %v401_v26 = vpop.f32.mrf.mxu0  ;;  %756 = vmatpush.msrb.mxu2 %v690_v44  ;;  %738 = vmatpush.msrb.mxu1 %v685_v56  ;;  %v781_v44 = vld [vmem:[%s1806_s5 + $0x90] sm:$0xff]  ;;  %v851_v56 = vld [vmem:[%s1808_s7 + $0x60] sm:$0xff] }
 0x12e   :  { %v661_v25 = vadd.f32 %v660_v52, %v593_v53  ;;  %v402_v35 = vadd.f32 %v1348_v1, %v401_v26  ;;  %v560_v53 = vmax.f32 %v423_v48, 0.0  ;;  %v774_v26 = vld [vmem:[%s1806_s5 + $0x58] sm:$0xff]  ;;  %v784_v48 = vld [vmem:[%s1806_s5 + $0xa8] sm:$0xff] }
 0x12f   :  { %757 = vmatpush.msrb.mxu2 %v688_v10  ;;  %803 = vmatpush.msrb.mxu3 %v774_v26  ;;  %v853_v10 = vld [vmem:[%s1808_s7 + $0x70] sm:$0xff]  ;;  %v843_v26 = vld [vmem:[%s1808_s7 + $0x20] sm:$0xff] }
 0x130   :  { %v553_v38 = vmax.f32 %v402_v35, 0.0  ;;  %v662_v9 = vadd.f32 %v661_v25, %v594_v59  ;;  %v435_v25 = vadd.f32 %v1348_v1, %v1433_v12  ;;  %v563_v35 = vmax.f32 %v432_v7, 0.0  ;;  %819 = vmatpush.msra.mxu1 %v794_v5  ;;  %v793_v1 = vld [vmem:[%s1806_s5 + $0xf0] sm:$0xff]  ;;  %v717_v7 = vld [vmem:[%s1805_s4] sm:$0x3]  ;;  %v840_v5 = vld [vmem:[%s1808_s7 + $0x8] sm:$0xff] }
 0x131   :  { %758 = vmatpush.msrb.mxu2 %v686_v58  ;;  %804 = vmatpush.msrb.mxu3 %v773_v3  ;;  %v846_v58 = vld [vmem:[%s1808_s7 + $0x38] sm:$0xff]  ;;  %v719_v57 = vperm.slane %v717_v7, 0 }
 0x132   :  { %v616_v22 = vadd.f32 %v615_v15, %v553_v38  ;;  %v663_v34 = vadd.f32 %v662_v9, %v595_v19  ;;  %v564_v12 = vmax.f32 %v435_v25, 0.0  ;;  %820 = vmatpush.msra.mxu1 %v793_v1  ;;  %v791_v9 = vld [vmem:[%s1806_s5 + $0xe0] sm:$0xff]  ;;  %v770_v19 = vld [vmem:[%s1806_s5 + $0x38] sm:$0xff] }
 0x133   :  { %805 = vmatpush.msrb.mxu3 %v772_v62  ;;  %v839_v62 = vld [vmem:[%s1808_s7] sm:$0xff] }
 0x134   :  { %v617_v27 = vadd.f32 %v616_v22, %v554_v24  ;;  %v664_v8 = vadd.f32 %v663_v34, %v596_v36  ;;  %v792_v24 = vld [vmem:[%s1806_s5 + $0xe8] sm:$0xff]  ;;  %v766_v36 = vld [vmem:[%s1806_s5 + $0x18] sm:$0xff]  ;;  %v997_v1 = vld [vmem:[%s1807_s6] ss:$0 sm:$0xff]  ;;  %s1059_s6 = smov [#allocation6]  }
 0x135   :  { %821 = vmatpush.msra.mxu1 %v792_v24  ;;  %806 = vmatpush.msrb.mxu3 %v771_v42  ;;  %v879_v42 = vlaneseq }
 0x136   :  { %v618_v61 = vadd.f32 %v617_v27, %v555_v20  ;;  %v665_v52 = vrot.slane %v664_v8, 4  ;;  %v768_v27 = vld [vmem:[%s1806_s5 + $0x28] sm:$0xff] }
 0x137   :  { %822 = vmatpush.msra.mxu1 %v791_v9  ;;  %807 = vmatpush.msrb.mxu3 %v770_v19  ;;  %v998_v9 = vld [vmem:[%s1809_s8] ss:$0 sm:$0xff]  ;;  %s901_s8 = sshll.u32 %s1810_s9, 4  ;;  %s902_s8 = int_to_ptr.hbm [resolvable:$true] %s901_s8 }
 0x138   :  { %v619_v43 = vadd.f32 %v618_v61, %v556_v32  ;;  %v666_v18 = vadd.f32 %v665_v52, %v664_v8  ;;  %v787_v61 = vld [vmem:[%s1806_s5 + $0xc0] sm:$0xff] }
 0x139   :  { %823 = vmatpush.msra.mxu1 %v790_v4  ;;  %808 = vmatpush.msrb.mxu3 %v769_v23  ;;  %v847_v52 = vld [vmem:[%s1808_s7 + $0x40] sm:$0xff] }
 0x13a   :  { %v620_v37 = vadd.f32 %v619_v43, %v557_v40  ;;  %v667_v38 = vrot.slane %v666_v18, 2  ;;  %v786_v40 = vld [vmem:[%s1806_s5 + $0xb8] sm:$0xff] }
 0x13b   :  { %824 = vmatpush.msra.mxu1 %v789_v13  ;;  %809 = vmatpush.msrb.mxu3 %v768_v27 }
 0x13c   :  { %v621_v11 = vadd.f32 %v620_v37, %v558_v17  ;;  %v668_v0 = vadd.f32 %v667_v38, %v666_v18  ;;  %v763_v37 = vld [vmem:[%s1806_s5] sm:$0xff]  ;;  %v720_v18 = vperm.slane %v717_v7, 1 }
 0x13d   :  { %825 = vmatpush.msra.mxu1 %v788_v30  ;;  %810 = vmatpush.msrb.mxu3 %v767_v31 }
 0x13e   :  { %v622_v51 = vadd.f32 %v621_v11, %v559_v41  ;;  %v669_v28 = vrot.slane %v668_v0, 1  ;;  %v780_v41 = vld [vmem:[%s1806_s5 + $0x88] sm:$0xff]  ;;  %v854_v11 = vld [vmem:[%s1808_s7 + $0x78] sm:$0xff] }
 0x13f   :  { %826 = vmatpush.msra.mxu1 %v787_v61  ;;  %811 = vmatpush.msrb.mxu3 %v766_v36 }
 0x140   :  { %v623_v59 = vadd.f32 %v622_v51, %v560_v53  ;;  %v670_v39 = vadd.f32 %v669_v28, %v668_v0  ;;  %859 = vmatpush.msra.mxu2 %v854_v11  ;;  %v850_v53 = vld [vmem:[%s1808_s7 + $0x58] sm:$0xff]  ;;  %v848_v51 = vld [vmem:[%s1808_s7 + $0x48] sm:$0xff] }
 0x141   :  { %827 = vmatpush.msra.mxu1 %v786_v40  ;;  %812 = vmatpush.msrb.mxu3 %v765_v47 }
 0x142   :  { %v624_v2 = vadd.f32 %v623_v59, %v561_v63  ;;  %v672_v17 = vmul.f32 0.00390625, %v670_v39  ;;  %860 = vmatpush.msra.mxu2 %v853_v10  ;;  %v845_v63 = vld [vmem:[%s1808_s7 + $0x30] sm:$0xff]  ;;  %v844_v59 = vld [vmem:[%s1808_s7 + $0x28] sm:$0xff] }
 0x143   :  { %828 = vmatpush.msra.mxu1 %v785_v29  ;;  %813 = vmatpush.msrb.mxu3 %v764_v60 }
 0x144   :  { %v625_v6 = vadd.f32 %v624_v2, %v562_v16  ;;  %861 = vmatpush.msra.mxu2 %v852_v55  ;;  %v842_v16 = vld [vmem:[%s1808_s7 + $0x18] sm:$0xff] }
 0x145   :  { %829 = vmatpush.msra.mxu1 %v784_v48  ;;  %814 = vmatpush.msrb.mxu3 %v763_v37 }
 0x146   :  { %v626_v15 = vadd.f32 %v625_v6, %v563_v35  ;;  %862 = vmatpush.msra.mxu2 %v851_v56  ;;  %v841_v6 = vld [vmem:[%s1808_s7 + $0x10] sm:$0xff]  ;;  %s899_s7 = sshll.u32 %s1059_s6, 4  ;;  %s900_s7 = int_to_ptr.vmem [resolvable:$true] %s899_s7 }
 0x147   :  { %830 = vmatpush.msra.mxu1 %v783_v33 }
 0x148   :  { %v627_v14 = vadd.f32 %v626_v15, %v564_v12  ;;  %863 = vmatpush.msra.mxu2 %v850_v53 }
 0x149   :  { %831 = vmatpush.msra.mxu1 %v782_v49 }
 0x14a   :  { %v628_v22 = vrot.slane %v627_v14, 4  ;;  %864 = vmatpush.msra.mxu2 %v849_v50 }
 0x14b   :  { %832 = vmatpush.msra.mxu1 %v781_v44 }
 0x14c   :  { %v629_v20 = vadd.f32 %v628_v22, %v627_v14  ;;  %865 = vmatpush.msra.mxu2 %v848_v51  ;;  %v880_v14 = vand.u32 127, %v879_v42 }
 0x14d   :  { %833 = vmatpush.msra.mxu1 %v780_v41 }
 0x14e   :  { %v630_v32 = vrot.slane %v629_v20, 2  ;;  %866 = vmatpush.msra.mxu2 %v847_v52  ;;  %vm881_vm3 = vcmp.lt.s32.totalorder %v880_v14, 10 }
 0x14f   :  { %834 = vmatpush.msra.mxu1 %v779_v54 }
 0x150   :  { %v631_v34 = vadd.f32 %v630_v32, %v629_v20  ;;  %867 = vmatpush.msra.mxu2 %v846_v58 }
 0x152   :  { %v632_v21 = vrot.slane %v631_v34, 1  ;;  %868 = vmatpush.msra.mxu2 %v845_v63 }
 0x154   :  { %v633_v43 = vadd.f32 %v632_v21, %v631_v34  ;;  %869 = vmatpush.msra.mxu2 %v844_v59 }
 0x156   :  { %v671_v45 = vmul.f32 0.00390625, %v633_v43  ;;  %870 = vmatpush.msra.mxu2 %v843_v26 }
 0x158   :  { %v677_v8 = vsel %vm676_vm2, %v672_v17, %v671_v45  ;;  %871 = vmatpush.msra.mxu2 %v842_v16 }
 0x159   :  { %680 = vst [vmem:[#allocation2] sm:$0x3] %v677_v8 }
 0x15a   :  { %872 = vmatpush.msra.mxu2 %v841_v6 }
 0x15c   :  { %873 = vmatpush.msra.mxu2 %v840_v5 }
 0x15e   :  { %874 = vmatpush.msra.mxu2 %v839_v62 }
 0x160   :  { %v684_v46 = vld [vmem:[#allocation2] sm:$0xff] }
 0x161   :  { %739 = vmatmul.f32.vlgmr.msrb.gmra.mxu1 %v684_v46  ;;  %759 = vmatmul.f32.vlgmr.msrb.gmra.mxu2 %v684_v46 }
 0x1de   :  { %v740_v25 = vpop.f32.mrf.mxu1 }
 0x1df   :  { %v741_v2 = vadd.f32 %v740_v25, %v719_v57 }
 0x1e1   :  { %815 = vmatmul.f32.vlgmr.msrb.gmra.mxu3 %v741_v2 }
 0x1e4   :  { %v760_v3 = vpop.f32.mrf.mxu2 }
 0x1e5   :  { %v761_v35 = vadd.f32 %v760_v3, %v720_v18 }
 0x1e7   :  { %835 = vmatmul.f32.vlgmr.msra.gmra.mxu1 %v761_v35 }
 0x264   :  { %v816_v12 = vpop.f32.mrf.mxu3  ;;  %v836_v38 = vpop.f32.mrf.mxu1 }
 0x265   :  { %v817_v15 = vadd.f32 %v997_v1, %v816_v12 }
 0x267   :  { %v837_v24 = vadd.f32 %v836_v38, %v817_v15 }
 0x269   :  { %875 = vmatmul.f32.vlgmr.msra.gmra.mxu2 %v837_v24 }
 0x2ec   :  { %v876_v19 = vpop.f32.mrf.mxu2 }
 0x2ed   :  { %v877_v22 = vadd.f32 %v998_v9, %v876_v19 }
 0x2ef   :  { %v882_v0 = vsel %vm881_vm3, %v877_v22, -inf }
 0x2f0   :  { %883 = vmax.xlane.f32.xlu0 %v882_v0 }
 0x363   :  { %v884_v4 = vpop.xlane.xlu0 %883 }
 0x364   :  { %v885_v23 = vsub.f32 %v882_v0, %v884_v4 }
 0x366   :  { %v886_v20 = vmul.f32 1.442695, %v885_v23 }
 0x368   :  { %999 = vpow2.f32 %v886_v20 }
 0x36e   :  { %v1000_v13 = vpop.eup %999 }
 0x36f   :  { %888 = vadd.xlane.f32.xlu0 %v1000_v13 }
 0x3e2   :  { %v889_v27 = vpop.xlane.xlu0 %888 }
 0x3e3   :  { %1001 = vlog2.f32 %v889_v27 }
 0x3e9   :  { %v1002_v32 = vpop.eup %1001 }
 0x3ea   :  { %v891_v28 = vmul.f32 0.6931472, %v1002_v32 }
 0x3ec   :  { %v892_v30 = vsub.f32 %v885_v23, %v891_v28 }
 0x3ee   :  { %893 = vst [vmem:[#allocation6] sm:$0xff] %v892_v30 }
 0x3ef   :  { %904 = dma.vmem_to_hbm [thread:$0]  %s900_s7, 128, %s902_s8, [#allocation5]  }
 0x3f0   :  { %1053 = dma.done.wait [#allocation5], 128  }
 0x3f1   :  { %1054 = vsyncadd [#allocation5], 4294967168 }
 0x3f2   :  { %909 = vsyncpa [#allocation4], 1 }
 0x3f3   :  { %910 = vsyncpa [#allocation5], 1 }

</bundles_post_ra>
